<compile_context>
chip_gen: v6e
topology: v6e:2x2x1
jax: 0.10.0
libtpu: 0.0.40
codegen_flags: <defaults>
</compile_context>

<pallas_src>
import jax
import jax.numpy as jnp
from jax.experimental import pallas as pl
from jax.experimental.pallas import tpu as pltpu


def _round_up(x, m):
    return (x + m - 1) // m * m


def _vmem_capacity_bytes():
    """Physical VMEM of the local TPU generation, with a conservative fallback."""
    try:
        return int(pltpu.get_tpu_info().vmem_capacity_bytes)
    except Exception:
        return 64 << 20  # v7x-sized fallback (tightest generation)


def _patch_embed_kernel(p_ref, w_ref, b_ref, o_ref):
    # MXU matmul with f32 accumulation, then a single broadcast bias add (VPU).
    acc = jnp.dot(p_ref[...], w_ref[...], preferred_element_type=jnp.float32)
    o_ref[...] = (acc + b_ref[...]).astype(o_ref.dtype)


def _choose_tile_m(M, K, N, in_itemsize, out_itemsize, vmem_capacity):
    """Pick the M tile size against the real VMEM capacity of this chip.

    Budget = half of physical VMEM (headroom for compiler scratch / pipeline).
    The weight + bias are resident (counted double-buffered, conservatively);
    the patches and output tiles are double-buffered by the pipeline.
    """
    budget = vmem_capacity // 2
    fixed = 2 * K * N * in_itemsize + 2 * N * 4            # resident weight + f32 bias
    per_row = 2 * (K * in_itemsize + N * out_itemsize)     # double-buffered in/out rows
    avail = budget - fixed
    if avail <= 256 * per_row:
        # Huge resident weight (e.g. very large hidden in f32): keep a minimal
        # but still MXU-aligned tile instead of collapsing below it.
        # TODO(synk): add an N grid axis here instead of shrinking tm.
        tm = 256
    else:
        tm = min(2048, avail // per_row)
        tm = max(256, (tm // 256) * 256)                   # 256-aligned for the MXU
    # Fit to the problem; guarantee >= 2 grid steps when there is enough work
    # so both TensorCores of dual-core parts get work ("parallel" semantics).
    if M <= 256:
        tm = min(tm, _round_up(M, 16))
    else:
        tm = min(tm, _round_up(pl.cdiv(M, 2), 16))
    return max(tm, 16)


def patch_embed_matmul(patches, w_t, bias, *, out_dtype):
    """patches: (M, K), w_t: (K, N), bias: (N,) -> (M, N) in out_dtype.

    M is tiled (double-buffered, pipelined against the MXU); the weight and
    bias stay resident in VMEM; K and N use full-extent blocks (no padding,
    no post-call slicing).  The partial boundary M block is masked by Pallas.
    """
    M, K = patches.shape
    K2, N = w_t.shape
    assert K == K2 and bias.shape == (N,)

    in_itemsize = jnp.dtype(patches.dtype).itemsize
    out_itemsize = jnp.dtype(out_dtype).itemsize

    capacity = _vmem_capacity_bytes()
    tm = _choose_tile_m(M, K, N, in_itemsize, out_itemsize, capacity)
    grid = (pl.cdiv(M, tm),)

    b = bias.astype(jnp.float32).reshape(1, N)

    vmem_need = (2 * tm * (K * in_itemsize + N * out_itemsize)
                 + 2 * K * N * in_itemsize + 2 * N * 4)
    vmem_limit = int(min(vmem_need + (16 << 20), (capacity * 4) // 5))

    cost = pl.CostEstimate(
        flops=2 * M * K * N,
        bytes_accessed=(M * K * in_itemsize + K * N * in_itemsize
                        + N * 4 + M * N * out_itemsize),
        transcendentals=0,
    )

    return pl.pallas_call(
        _patch_embed_kernel,
        out_shape=jax.ShapeDtypeStruct((M, N), out_dtype),
        grid=grid,
        in_specs=[
            pl.BlockSpec((tm, K), lambda i: (i, 0)),   # patches tile (pipelined)
            pl.BlockSpec((K, N), lambda i: (0, 0)),    # weight, VMEM-resident
            pl.BlockSpec((1, N), lambda i: (0, 0)),    # f32 bias, VMEM-resident
        ],
        out_specs=pl.BlockSpec((tm, N), lambda i: (i, 0)),
        compiler_params=pltpu.CompilerParams(
            dimension_semantics=("parallel",),
            vmem_limit_bytes=vmem_limit,
        ),
        cost_estimate=cost,
    )(patches, w_t, b)


def vit_patch_embedding(pixel_values, conv_weight, conv_bias, patch_size,
                        compute_dtype=jnp.bfloat16, out_dtype=None):
    """Forward pass of ViTPatchEmbedding.

    pixel_values : (B, C, H, W)   [NCHW, like PyTorch]
    conv_weight  : (hidden, C, ph, pw)
    conv_bias    : (hidden,)
    compute_dtype: matmul operand dtype; bf16 by default (f32 accumulation and
                   the f32 bias add stay in-kernel).  Pass jnp.float32 for an
                   exact match of the f32 conv reference.
    out_dtype    : output dtype; defaults to pixel_values.dtype.  Pass
                   jnp.bfloat16 when the downstream consumer accepts bf16
                   activations to halve the output HBM write.
    returns      : (B, num_patches, hidden)
    """
    B, C, H, W = pixel_values.shape
    hidden = conv_weight.shape[0]
    ph, pw = patch_size
    Hp, Wp = H // ph, W // pw
    num_patches = Hp * Wp

    if out_dtype is None:
        out_dtype = pixel_values.dtype
    if compute_dtype is None:
        compute_dtype = pixel_values.dtype

    # --- glue: extract non-overlapping patches, flatten over (C, ph, pw) -----
    # Cast to the (narrower) compute dtype BEFORE the rearrange so the
    # materialized patches buffer is bf16; XLA fuses cast+transpose+reshape
    # into a single HBM pass under the same jit.
    # TODO(synk): fold this gather into the kernel's own DMA (see header note).
    x = pixel_values.astype(compute_dtype).reshape(B, C, Hp, ph, Wp, pw)
    x = jnp.transpose(x, (0, 2, 4, 1, 3, 5))              # (B, Hp, Wp, C, ph, pw)
    patches = x.reshape(B * num_patches, C * ph * pw)

    # conv weight (hidden, C, ph, pw) -> (K, hidden)
    w_t = conv_weight.reshape(hidden, C * ph * pw).T.astype(compute_dtype)

    out = patch_embed_matmul(patches, w_t, conv_bias, out_dtype=out_dtype)
    return out.reshape(B, num_patches, hidden)


if __name__ == "__main__":
    # Small, forward-consistent shapes: batch=2, channels=4, image 16x16,
    # patch 4x4 -> num_patches=16, hidden=32.
    B, C, H, W = 2, 4, 16, 16
    ph, pw = 4, 4
    hidden = 32

    key = jax.random.PRNGKey(0)
    k_x, k_w, k_b = jax.random.split(key, 3)
    pixel_values = jax.random.normal(k_x, (B, C, H, W), dtype=jnp.float32)
    conv_weight = jax.random.normal(k_w, (hidden, C, ph, pw), dtype=jnp.float32) * 0.02
    conv_bias = jax.random.normal(k_b, (hidden,), dtype=jnp.float32) * 0.02

    embed = jax.jit(vit_patch_embedding,
                    static_argnames=("patch_size", "compute_dtype", "out_dtype"))

    # Default (production) path: bf16 MXU operands, f32 accumulation, f32 output.
    out_bf16 = jax.block_until_ready(
        embed(pixel_values, conv_weight, conv_bias, (ph, pw)))
    # Exact f32 path for verification against the conv reference.
    out_f32 = jax.block_until_ready(
        embed(pixel_values, conv_weight, conv_bias, (ph, pw),
              compute_dtype=jnp.float32))

    # Reference: lax conv (same semantics as nn.Conv2d stride=kernel).
    ref = jax.lax.conv_general_dilated(
        pixel_values, conv_weight, window_strides=(ph, pw), padding="VALID",
        dimension_numbers=("NCHW", "OIHW", "NCHW"))
    ref = ref + conv_bias.reshape(1, hidden, 1, 1)
    ref = ref.reshape(B, hidden, -1).transpose(0, 2, 1)  # flatten(2).transpose(1,2)

    assert out_f32.shape == (B, (H // ph) * (W // pw), hidden)
    assert out_bf16.shape == out_f32.shape
    assert out_bf16.dtype == pixel_values.dtype
    assert jnp.allclose(out_f32, ref, atol=1e-4, rtol=1e-4)
    assert jnp.allclose(out_bf16, ref, atol=5e-2, rtol=5e-2)

    print("KERNEL_OK")
</pallas_src>

<mosaic_0001>
module attributes {stable_mosaic.version = 11 : i64} {
  func.func @_patch_embed_kernel(%arg0: i32, %arg1: memref<32x64xbf16, #tpu.memory_space<vmem>>, %arg2: memref<64x32xbf16, #tpu.memory_space<vmem>>, %arg3: memref<1x32xf32, #tpu.memory_space<vmem>>, %arg4: memref<32x32xf32, #tpu.memory_space<vmem>>) attributes {dimension_semantics = [#tpu.dimension_semantics<parallel>], iteration_bounds = array<i64: 1>, scalar_prefetch = 0 : i64, scratch_operands = 0 : i64, tpu.core_type = #tpu.core_type<tc>, window_params = [{transform_indices = @transform_0, window_bounds = array<i64: 32, 64>}, {pipeline_mode = #tpu.pipeline_mode<synchronous>, transform_indices = @transform_1, window_bounds = array<i64: 64, 32>}, {pipeline_mode = #tpu.pipeline_mode<synchronous>, transform_indices = @transform_2, window_bounds = array<i64: 1, 32>}, {transform_indices = @transform_3, window_bounds = array<i64: 32, 32>}]} {
    %c0 = arith.constant 0 : index
    %c0_0 = arith.constant 0 : index
    %0 = vector.load %arg1[%c0, %c0_0] : memref<32x64xbf16, #tpu.memory_space<vmem>>, vector<32x64xbf16>
    %c0_1 = arith.constant 0 : index
    %c0_2 = arith.constant 0 : index
    %1 = vector.load %arg2[%c0_1, %c0_2] : memref<64x32xbf16, #tpu.memory_space<vmem>>, vector<64x32xbf16>
    %cst = arith.constant dense<0.000000e+00> : vector<32x32xf32>
    %2 = tpu.matmul %0, %1, %cst {dimension_numbers = #tpu.dot_dimension_numbers<[1], [0], [0], [1], [0, 0, 1, 1], [], []>} : vector<32x64xbf16>, vector<64x32xbf16>, vector<32x32xf32> -> vector<32x32xf32>
    %c0_3 = arith.constant 0 : index
    %c0_4 = arith.constant 0 : index
    %3 = vector.load %arg3[%c0_3, %c0_4] : memref<1x32xf32, #tpu.memory_space<vmem>>, vector<1x32xf32>
    %4 = vector.broadcast %3 : vector<1x32xf32> to vector<32x32xf32>
    %5 = arith.addf %2, %4 : vector<32x32xf32>
    %c0_5 = arith.constant 0 : index
    %c0_6 = arith.constant 0 : index
    %6 = vector.load %arg4[%c0_5, %c0_6] : memref<32x32xf32, #tpu.memory_space<vmem>>, vector<32x32xf32>
    tpu.vector_store %arg4[%c0_5, %c0_6], %5 {strides = array<i32>} : memref<32x32xf32, #tpu.memory_space<vmem>>, vector<32x32xf32>,
    return
  }
  func.func @transform_0(%arg0: i32) -> (i32, i32) {
    %c0_i32 = arith.constant 0 : i32
    %c0_i32_0 = arith.constant 0 : i32
    return %arg0, %c0_i32 : i32, i32
  }
  func.func @transform_1(%arg0: i32) -> (i32, i32) {
    %c0_i32 = arith.constant 0 : i32
    %c0_i32_0 = arith.constant 0 : i32
    %c0_i32_1 = arith.constant 0 : i32
    return %c0_i32, %c0_i32_0 : i32, i32
  }
  func.func @transform_2(%arg0: i32) -> (i32, i32) {
    %c0_i32 = arith.constant 0 : i32
    %c0_i32_0 = arith.constant 0 : i32
    %c0_i32_1 = arith.constant 0 : i32
    return %c0_i32, %c0_i32_0 : i32, i32
  }
  func.func @transform_3(%arg0: i32) -> (i32, i32) {
    %c0_i32 = arith.constant 0 : i32
    %c0_i32_0 = arith.constant 0 : i32
    return %arg0, %c0_i32 : i32, i32
  }
}

</mosaic_0001>

<bundles_post_ra>
// kernel: vit_patch_embedding.1
= control target key start
LH: loop header
LB: loop body
LE: loop exit
PB: predicated region body
PF: predicated region fallthrough
CT: control target
= control target key end

     0   :  { %vm69_vm0 = vcmask 523264   ;;  %s251_s0 = inlined_call_operand.vmem [shape: bf16[32,64], index: 0, kind: input, shape index: {}]   ;;  %s252_s1 = inlined_call_operand.vmem [shape: bf16[64,32], index: 1, kind: input, shape index: {}]   ;;  %s253_s2 = inlined_call_operand.vmem [shape: f32[1,32], index: 2, kind: input, shape index: {}]   ;;  %s254_s3 = inlined_call_operand.hbm [shape: f32[32,32], index: 3, kind: output, shape index: {}]  }
   0x1   :  { %v176_v0 = vld [vmem:[%s252_s1 + $0x18] sm:$0xff]   ;;  %v177_v1 = vld [vmem:[%s252_s1 + $0x10] sm:$0xff]   ;;  %v178_v2 = vld [vmem:[%s252_s1 + $0x8] sm:$0xff]  }
   0x2   :  { %161 = vmatprep.subr.bf16.mxu0 %v176_v0  ;;  %v180_v3 = vld [vmem:[%s251_s0] sm:$0xff]  }
   0x3   :  { %162 = vmatpush3.bf16.msra.mxu0 %v176_v0  ;;  %169 = vmatprep.mubr.msk.bf16.mxu0 %vm69_vm0, %v180_v3 }
   0x4   :  { %163 = vmatprep.subr.bf16.mxu0 %v177_v1 }
   0x5   :  { %8 = vsyncpa [#allocation3], 0  ;;  %v179_v4 = vld [vmem:[%s252_s1] sm:$0xff]   ;;  %v181_v5 = vld [vmem:[%s251_s0 + $0x8] sm:$0xff]   ;;  %vm125_vm1 = vcmask 261120   ;;  %s204_s26 = smov [#allocation2]  }
   0x6   :  { %v146_v6 = vld [vmem:[%s253_s2] ss:$0 sm:$0xff]  ;;  %s135_s1 = sshll.u32 %s204_s26, 4  ;;  %s136_s1 = int_to_ptr.vmem [resolvable:$true] %s135_s1 }
   0x7   :  { %164 = vmatpush3.bf16.msra.mxu0 %v177_v1  ;;  %s182_s0 = scalar_lea.vmem %s136_s1, 512  ;;  %p187_p1 = scmp.lt.s32.totalorder %s136_s1, %s136_s1 }
   0x8   :  { %165 = vmatprep.subr.bf16.mxu0 %v178_v2  ;;  %p183_p0 = scmp.ne.s32.totalorder %s136_s1, %s182_s0  ;;  %p188_p2 = scmp.lt.s32.totalorder %s182_s0, %s182_s0 }
   0xa   :  { %p189_p3 = por %p188_p2, %p187_p1 }
   0xb   :  { %166 = vmatpush3.bf16.msra.mxu0 %v178_v2 }
   0xc   :  { %167 = vmatprep.subr.bf16.mxu0 %v179_v4  ;;  %p190_p4 = pnand %p189_p3, %p183_p0 }
   0xf   :  { %168 = vmatpush3.bf16.msra.mxu0 %v179_v4 }
  0x12   :  { %170 = vmatmul.mubr.msk.bf16.vlgmr.msra.gmra.mxu0 %vm69_vm0, %v181_v5 }
  0xd2   :  { %v171_v7 = vpop.f32.mrf.mxu0 }
  0xd3   :  { %v119_v8 = vadd.f32 %v171_v7, %v146_v6 }
  0xd4   :  { %v110_v9 = vpop.f32.mrf.mxu0 }
  0xd5   :  { %128 = vst.msk [vmem:[#allocation2 + $0x10] sm:$0xff] %vm125_vm1, %v119_v8  ;;  %v111_v10 = vadd.f32 %v146_v6, %v110_v9 }
  0xd6   :  { %v172_v11 = vpop.f32.mrf.mxu0 }
  0xd7   :  { %126 = vst.msk [vmem:[#allocation2] sm:$0xff] %vm125_vm1, %v111_v10  ;;  %v122_v12 = vadd.f32 %v172_v11, %v146_v6 }
  0xd8   :  { %v113_v13 = vpop.f32.mrf.mxu0 }
  0xd9   :  { %129 = vst.msk [vmem:[#allocation2 + $0x18] sm:$0xff] %vm125_vm1, %v122_v12  ;;  %v114_v14 = vadd.f32 %v146_v6, %v113_v13 }
  0xdb   :  { %127 = vst.msk [vmem:[#allocation2 + $0x8] sm:$0xff] %vm125_vm1, %v114_v14 }
  0xdc   :  { %193 = shalt.err (!%p190_p4)
}
  0xdd   :  { %s205_s2 = smov 128   ;;  %s206_s27 = smov 8  }
  0xde   :  { %141 = dma.vmem_to_hbm [thread:$0]  %s136_s1, 512, %s254_s3, [#allocation3], %s205_s2, %s205_s2, %s206_s27  }
  0xdf   :  { %202 = dma.done.wait [#allocation3], 512  }
  0xe0   :  { %203 = vsyncadd [#allocation3], 4294966784 }
  0xe1   :  { %145 = vsyncpa [#allocation3], 1 }

</bundles_post_ra>
